<compile_context>
chip_gen: v6e
topology: v6e:2x2x1
jax: 0.10.0
libtpu: 0.0.40
codegen_flags: <defaults>
</compile_context>

<pallas_src>
import jax
import jax.numpy as jnp
from jax.experimental import pallas as pl
from jax.experimental.pallas import tpu as pltpu


def _mul_kernel(a_ref, b_ref, o_ref):
    o_ref[...] = a_ref[...] * b_ref[...]


# Lane-width candidates: prefer 1-2K lanes (already fully unmasked vst
# territory) so rows -- and hence grid length -- stays large.  128 always
# divides the aligned prefix, so no padding fallback is ever needed.
_LANE_CANDIDATES = (2048, 1024, 512, 256, 128)
_SMALL_BYTES = 512 * 1024        # single-block (no-grid) path only below this
_MIN_GRID_STEPS = 8              # keep both v7x TCs busy + real pipelining
_SUBLANE = {4: 8, 2: 16, 1: 32}  # itemsize -> sublane multiple


def _round_up(x, m):
    return ((x + m - 1) // m) * m


def _chip_budget():
    """Generation-aware (tile_bytes, vmem_limit); conservative v7x default."""
    tile_bytes = 4 * 1024 * 1024       # 3 arrays x 2 bufs x 4 MiB = 24 MiB
    vmem_limit = 48 * 1024 * 1024      # < v7x 64 MiB VMEM/TC, > v5e 16 MiB scoped default
    try:
        info = pltpu.get_tpu_info()
        cap = getattr(info, "vmem_capacity_bytes", 0)
        if cap and cap >= 100 * 1024 * 1024:   # v5e / v6e: 128 MiB VMEM per TC
            tile_bytes = 8 * 1024 * 1024       # fewer grid steps (~0.35 us each)
            vmem_limit = 96 * 1024 * 1024
    except Exception:
        pass  # fall back to the v7x-safe defaults
    return tile_bytes, vmem_limit


_TILE_BYTES, _VMEM_LIMIT = _chip_budget()


def _choose_lanes(main):
    for lanes in _LANE_CANDIDATES:
        if main % lanes == 0:
            return lanes
    return 128  # unreachable: main is a multiple of 128


def pallas_mul(a: jax.Array, b: jax.Array) -> jax.Array:
    """Elementwise multiply (torch.mul semantics) via a Pallas TPU kernel."""
    a = jnp.asarray(a)
    b = jnp.asarray(b)
    # torch.mul dtype promotion / broadcasting.
    if a.dtype != b.dtype:
        dt = jnp.promote_types(a.dtype, b.dtype)
        a = a.astype(dt)
        b = b.astype(dt)
    if a.shape != b.shape:
        # TODO(synk): broadcast is materialized before the kernel (no in-kernel broadcast).
        shape = jnp.broadcast_shapes(a.shape, b.shape)
        a = jnp.broadcast_to(a, shape)
        b = jnp.broadcast_to(b, shape)

    orig_shape = a.shape
    total = 1
    for d in orig_shape:
        total *= d
    if total == 0:
        return a * b

    itemsize = jnp.dtype(a.dtype).itemsize
    sublane = _SUBLANE.get(itemsize, 8)

    # 128-aligned prefix goes through the kernel; the (<128-elem) tail, if any,
    # is computed with plain XLA (no whole-tensor pad / slice copies).
    main = (total // 128) * 128
    tail = total - main
    if main == 0:
        return a * b  # tiny tensor: not worth a custom call

    af = a.reshape(-1)
    bf = b.reshape(-1)
    am = af if tail == 0 else af[:main]
    bm = bf if tail == 0 else bf[:main]

    lanes = _choose_lanes(main)
    rows = main // lanes
    a2 = am.reshape(rows, lanes)
    b2 = bm.reshape(rows, lanes)

    main_bytes = main * itemsize
    if main_bytes <= _SMALL_BYTES:
        # Tiny fast path: whole slab as a single VMEM block, no grid machinery.
        out2 = pl.pallas_call(
            _mul_kernel,
            out_shape=jax.ShapeDtypeStruct((rows, lanes), a2.dtype),
            in_specs=[pl.BlockSpec(memory_space=pltpu.MemorySpace.VMEM)] * 2,
            out_specs=pl.BlockSpec(memory_space=pltpu.MemorySpace.VMEM),
        )(a2, b2)
    else:
        # 1D row sweep, full lane-width blocks, dtype-aware sublane rounding.
        tr = (_TILE_BYTES // (lanes * itemsize)) // sublane * sublane
        tr = max(sublane, tr)
        # Cap tile so the grid has >= _MIN_GRID_STEPS steps (megacore + pipeline).
        tr_cap = max(sublane, _round_up(pl.cdiv(rows, _MIN_GRID_STEPS), sublane))
        tr = min(tr, tr_cap, _round_up(rows, sublane))
        grid = (pl.cdiv(rows, tr),)

        out2 = pl.pallas_call(
            _mul_kernel,
            out_shape=jax.ShapeDtypeStruct((rows, lanes), a2.dtype),
            grid=grid,
            in_specs=[
                pl.BlockSpec((tr, lanes), lambda i: (i, 0)),
                pl.BlockSpec((tr, lanes), lambda i: (i, 0)),
            ],
            out_specs=pl.BlockSpec((tr, lanes), lambda i: (i, 0)),
            compiler_params=pltpu.CompilerParams(
                dimension_semantics=("parallel",),
                vmem_limit_bytes=_VMEM_LIMIT,
            ),
            cost_estimate=pl.CostEstimate(
                flops=main,
                transcendentals=0,
                bytes_accessed=3 * main * itemsize,
            ),
        )(a2, b2)

    out_flat = out2.reshape(-1)
    if tail:
        out_flat = jnp.concatenate([out_flat, af[main:] * bf[main:]])
    return out_flat.reshape(orig_shape)


# jit so the wrapper's reshapes fuse with the pallas_call.
pallas_mul_jit = jax.jit(pallas_mul)


if __name__ == "__main__":
    key = jax.random.PRNGKey(0)
    ks = jax.random.split(key, 8)

    # 1) Module-sized input (batch=2, channels=4, 16x16) -> tiny single-block path.
    shape0 = (2, 4, 16, 16)
    a0 = jax.random.normal(ks[0], shape0, dtype=jnp.float32)
    b0 = jax.random.normal(ks[1], shape0, dtype=jnp.float32)
    o0 = jax.block_until_ready(pallas_mul_jit(a0, b0))
    assert o0.shape == shape0 and o0.dtype == a0.dtype
    assert jnp.allclose(o0, a0 * b0, atol=1e-6, rtol=1e-6)

    # 2) Larger f32 tensor -> gridded 1D row sweep (multi-step, megacore-friendly).
    shape1 = (4, 8, 128, 256)
    a1 = jax.random.normal(ks[2], shape1, dtype=jnp.float32)
    b1 = jax.random.normal(ks[3], shape1, dtype=jnp.float32)
    o1 = jax.block_until_ready(pallas_mul_jit(a1, b1))
    assert jnp.allclose(o1, a1 * b1, atol=1e-6, rtol=1e-6)

    # 3) bf16 tensor -> exercises the 16-row sublane rounding on the large path.
    shape2 = (8, 8, 128, 128)
    a2 = jax.random.normal(ks[4], shape2, dtype=jnp.bfloat16)
    b2 = jax.random.normal(ks[5], shape2, dtype=jnp.bfloat16)
    o2 = jax.block_until_ready(pallas_mul_jit(a2, b2))
    assert jnp.allclose(o2.astype(jnp.float32), (a2 * b2).astype(jnp.float32),
                        atol=1e-2, rtol=1e-2)

    # 4) Total not a multiple of 128 -> aligned prefix through kernel + XLA tail.
    shape3 = (17, 130)
    a3 = jax.random.normal(ks[6], shape3, dtype=jnp.float32)
    b3 = jax.random.normal(ks[7], shape3, dtype=jnp.float32)
    o3 = jax.block_until_ready(pallas_mul_jit(a3, b3))
    assert jnp.allclose(o3, a3 * b3, atol=1e-6, rtol=1e-6)

    print("KERNEL_OK")
</pallas_src>

<mosaic_0001>
module attributes {stable_mosaic.version = 11 : i64} {
  func.func @_mul_kernel(%arg0: memref<1x2048xf32, #tpu.memory_space<vmem>>, %arg1: memref<1x2048xf32, #tpu.memory_space<vmem>>, %arg2: memref<1x2048xf32, #tpu.memory_space<vmem>>) attributes {dimension_semantics = [], scalar_prefetch = 0 : i64, scratch_operands = 0 : i64, tpu.core_type = #tpu.core_type<tc>} {
    %c0 = arith.constant 0 : index
    %c0_0 = arith.constant 0 : index
    %0 = vector.load %arg0[%c0, %c0_0] : memref<1x2048xf32, #tpu.memory_space<vmem>>, vector<1x2048xf32>
    %c0_1 = arith.constant 0 : index
    %c0_2 = arith.constant 0 : index
    %1 = vector.load %arg1[%c0_1, %c0_2] : memref<1x2048xf32, #tpu.memory_space<vmem>>, vector<1x2048xf32>
    %2 = arith.mulf %0, %1 : vector<1x2048xf32>
    %c0_3 = arith.constant 0 : index
    %c0_4 = arith.constant 0 : index
    %3 = vector.load %arg2[%c0_3, %c0_4] : memref<1x2048xf32, #tpu.memory_space<vmem>>, vector<1x2048xf32>
    tpu.vector_store %arg2[%c0_3, %c0_4], %2 {strides = array<i32>} : memref<1x2048xf32, #tpu.memory_space<vmem>>, vector<1x2048xf32>,
    return
  }
}

</mosaic_0001>

<bundles_post_ra>
// kernel: pallas_mul.1
= control target key start
LH: loop header
LB: loop body
LE: loop exit
PB: predicated region body
PF: predicated region fallthrough
CT: control target
= control target key end

     0   :  { %s56_s0 = inlined_call_operand.vmem [shape: f32[1,2048], index: 0, kind: input, shape index: {}]   ;;  %s57_s1 = inlined_call_operand.vmem [shape: f32[1,2048], index: 1, kind: input, shape index: {}]   ;;  %s58_s2 = inlined_call_operand.vmem [shape: f32[1,2048], index: 2, kind: output, shape index: {}]  }
   0x1   :  { %v11_v0 = vld [vmem:[%s56_s0] sm:$0xff]  ;;  %v12_v2 = vld [vmem:[%s56_s0 + $0x8] sm:$0xff] }
   0x2   :  { %v13_v1 = vld [vmem:[%s57_s1] sm:$0xff]  ;;  %v14_v4 = vld [vmem:[%s57_s1 + $0x8] sm:$0xff] }
   0x3   :  { %v15_v3 = vmul.f32 %v13_v1, %v11_v0  ;;  %v16_v5 = vmul.f32 %v14_v4, %v12_v2 }
   0x5   :  { %17 = vst [vmem:[%s58_s2] sm:$0xff] %v15_v3  ;;  %18 = vst [vmem:[%s58_s2 + $0x8] sm:$0xff] %v16_v5 }

</bundles_post_ra>
